<compile_context>
chip_gen: v6e
topology: v6e:2x2x1
jax: 0.10.0
libtpu: 0.0.40
codegen_flags: <defaults>
</compile_context>

<pallas_src>
import functools
import math

import jax
import jax.numpy as jnp
from jax import lax
from jax.experimental import pallas as pl
from jax.experimental.pallas import tpu as pltpu

_LANE = 128


def _round_up(x, m):
    return ((x + m - 1) // m) * m


def _vmem_capacity_bytes():
    """Physical VMEM of the current TPU generation (conservative fallback)."""
    try:
        info = pltpu.get_tpu_info()
        cap = getattr(info, "vmem_capacity_bytes", None)
        if cap:
            return int(cap)
    except Exception:
        pass
    return 64 * 1024 * 1024  # v7x per-TensorCore VMEM (smallest current gen)


def _var_kernel_single(x_ref, o_ref, *, rg, inv_n, inv_nm1):
    """Variance over the lane (time) axis; the whole T fits in one block.

    x_ref: (tr, T) input tile, o_ref: (tr, 1) per-row unbiased variance.
    VPU-only, per-row-group register accumulation, no scratch / phases.
    """
    tr, t = x_ref.shape
    n_full = t // _LANE
    w_tail = t - n_full * _LANE
    n_groups = tr // rg

    @pl.loop(0, n_groups)
    def _group(g):
        r0 = pl.multiple_of(g * rg, rg)
        rows = pl.ds(r0, rg)
        # Per-row shift by the first sample: variance is shift-invariant and
        # this kills the E[x^2]-E[x]^2 cancellation when |mean| >> std.
        shift = x_ref[rows, pl.ds(0, 1)].astype(jnp.float32)          # (rg, 1)
        s_row = jnp.zeros((rg, 1), jnp.float32)
        q_row = jnp.zeros((rg, 1), jnp.float32)
        if n_full:
            shift_b = jnp.broadcast_to(shift, (rg, _LANE))            # hoisted
            s_g = jnp.zeros((rg, _LANE), jnp.float32)
            q_g = jnp.zeros((rg, _LANE), jnp.float32)
            for c in range(n_full):                                   # static
                xs = x_ref[rows, pl.ds(c * _LANE, _LANE)].astype(jnp.float32)
                xs = xs - shift_b
                s_g = s_g + xs
                q_g = q_g + xs * xs
            s_row = s_row + jnp.sum(s_g, axis=-1, keepdims=True)
            q_row = q_row + jnp.sum(q_g, axis=-1, keepdims=True)
        if w_tail:
            xs = x_ref[rows, pl.ds(n_full * _LANE, w_tail)].astype(jnp.float32)
            xs = xs - shift
            s_row = s_row + jnp.sum(xs, axis=-1, keepdims=True)
            q_row = q_row + jnp.sum(xs * xs, axis=-1, keepdims=True)
        var = (q_row - s_row * s_row * inv_n) * inv_nm1
        o_ref[rows, :] = jnp.maximum(var, 0.0).astype(o_ref.dtype)


def _var_kernel_chunked(x_ref, o_ref, s_ref, q_ref, shift_ref, *,
                        rg, t_total, tt, inv_n, inv_nm1, need_mask):
    """Variance with the time axis chunked along the trailing 'arbitrary' axis.

    x_ref: (tr, tt) chunk (tt % 128 == 0), o_ref: (tr, 1),
    s_ref/q_ref: (tr, 128) f32 running lane-wise sums, shift_ref: (tr, 1) f32.
    """
    j = pl.program_id(1)
    nt = pl.num_programs(1)
    tr = x_ref.shape[0]
    n_chunks = tt // _LANE
    n_groups = tr // rg
    # Columns past T exist only in the last time block; only lane chunks that
    # can overlap that tail need a runtime mask (static filter below).
    t_last = (t_total % tt) if need_mask else tt

    @pl.when(j == 0)
    def _init():
        s_ref[...] = jnp.zeros_like(s_ref)
        q_ref[...] = jnp.zeros_like(q_ref)
        shift_ref[...] = x_ref[:, pl.ds(0, 1)].astype(jnp.float32)

    valid = t_total - j * tt  # number of in-range columns of this block

    @pl.loop(0, n_groups)
    def _group(g):
        r0 = pl.multiple_of(g * rg, rg)
        rows = pl.ds(r0, rg)
        shift_b = jnp.broadcast_to(shift_ref[rows, :], (rg, _LANE))
        s_g = jnp.zeros((rg, _LANE), jnp.float32)
        q_g = jnp.zeros((rg, _LANE), jnp.float32)
        for c in range(n_chunks):                                     # static
            xs = x_ref[rows, pl.ds(c * _LANE, _LANE)].astype(jnp.float32)
            xs = xs - shift_b
            if need_mask and (c + 1) * _LANE > t_last:
                col = lax.broadcasted_iota(jnp.int32, (rg, _LANE), 1) + c * _LANE
                xs = jnp.where(col < valid, xs, 0.0)
            s_g = s_g + xs
            q_g = q_g + xs * xs
        s_ref[rows, :] += s_g
        q_ref[rows, :] += q_g

    @pl.when(j == nt - 1)
    def _finalize():
        @pl.loop(0, n_groups)
        def _fin_group(g):
            r0 = pl.multiple_of(g * rg, rg)
            rows = pl.ds(r0, rg)
            s = jnp.sum(s_ref[rows, :], axis=-1, keepdims=True)
            q = jnp.sum(q_ref[rows, :], axis=-1, keepdims=True)
            var = (q - s * s * inv_n) * inv_nm1
            o_ref[rows, :] = jnp.maximum(var, 0.0).astype(o_ref.dtype)


def var_layer(x, dim=-1, *, use_pallas=None, block_time=None):
    """Pallas equivalent of VarLayer(dim): unbiased variance along dim, keepdim."""
    x = jnp.asarray(x)
    ndim = x.ndim
    dim = dim % ndim
    out_shape_full = tuple(1 if a == dim else s for a, s in enumerate(x.shape))
    out_dtype = x.dtype if jnp.issubdtype(x.dtype, jnp.floating) else jnp.float32

    T = int(x.shape[dim])
    if T < 2:
        # torch.var with the default correction=1 of a single sample is NaN.
        return jnp.full(out_shape_full, jnp.nan, dtype=out_dtype)

    if use_pallas is None:
        # Tiny inputs (launch overhead dominates) and short time axes
        # (< 1 vreg lane width => poor DMA/lane utilization) go to fused XLA.
        # TODO(synk): pack 128//T rows per lane row (segmented reduce) so the
        # Pallas path also hits the HBM roofline for T < 128.
        use_pallas = (x.size * x.dtype.itemsize >= (1 << 16)) and (T >= 128)
    if not use_pallas:
        return jnp.var(x, axis=dim, keepdims=True, ddof=1).astype(out_dtype)

    if dim != ndim - 1:
        # TODO(synk): fold a non-last-dim reduction into the BlockSpec
        # index_map instead of paying an HBM transpose, if this becomes hot.
        perm = [a for a in range(ndim) if a != dim] + [dim]
        xt = jnp.transpose(x, perm)
    else:
        perm = None
        xt = x
    lead_shape = xt.shape[:-1]
    R = int(math.prod(lead_shape)) if lead_shape else 1
    x2 = xt.reshape(R, T)
    if not jnp.issubdtype(x2.dtype, jnp.floating):
        x2 = x2.astype(jnp.float32)

    itemsize = x2.dtype.itemsize
    sub = {4: 8, 2: 16, 1: 32}.get(itemsize, 8)  # sublane granularity per dtype

    cap = _vmem_capacity_bytes()
    usable = (cap * 6) // 10                      # pipeline working-set ceiling
    # ~8 MiB blocks on 128 MiB parts (v5e/v6e), ~4 MiB on 64 MiB parts (v7x).
    target = (8 << 20) if cap >= (128 << 20) else (4 << 20)
    target = min(target, usable // 2)             # two in-flight input blocks

    # --- time axis: whole T in one block for the common case; otherwise chunk
    # in multiples of 128 lanes (bounded static unroll) on an "arbitrary" axis.
    max_tt = 16 * _LANE
    if block_time is not None:
        tt = T if T <= _LANE else max(_LANE, (min(int(block_time), T) // _LANE) * _LANE)
    elif T <= max_tt:
        tt = T
    else:
        tt = min(max_tt, max(_LANE, ((target // (sub * itemsize)) // _LANE) * _LANE))
    t_grid = pl.cdiv(T, tt)
    if t_grid == 1:
        tt = T

    # --- row axis: ~target-byte blocks; always >= 2 row blocks when possible
    # (double-buffered pipelining, megacore / v7x 2-TC "parallel" split).
    tr = max(sub, ((target // (tt * itemsize)) // sub) * sub)
    if R <= sub:
        tr = R
    elif tr >= R:
        tr = _round_up(pl.cdiv(R, 2), sub)
    r_grid = pl.cdiv(R, tr)
    # TODO(synk): if r_grid == 1 and t_grid > 1 (tall-T, tiny-R), split T on a
    # leading "parallel" axis with an XLA combine epilogue so both v7x cores work.

    # Row-group size: per-group register accumulators stay at ~16-24 vregs.
    rg = tr
    for cand in (64, 32, 16, 8):
        if cand <= tr and tr % cand == 0:
            rg = cand
            break

    out_itemsize = jnp.dtype(out_dtype).itemsize
    block_bytes = tr * tt * itemsize
    out_block_bytes = tr * _LANE * out_itemsize          # minor dim pads to 128
    scratch_bytes = (3 * tr * _LANE * 4) if t_grid > 1 else 0
    vmem_need = 2 * block_bytes + 2 * out_block_bytes + scratch_bytes
    vmem_limit = int(min((cap * 9) // 10, max(vmem_need + (4 << 20), 32 << 20)))

    inv_n = 1.0 / T
    inv_nm1 = 1.0 / (T - 1)

    if t_grid == 1:
        kernel = functools.partial(_var_kernel_single, rg=rg,
                                   inv_n=inv_n, inv_nm1=inv_nm1)
        grid_spec = pltpu.PrefetchScalarGridSpec(
            num_scalar_prefetch=0,
            grid=(r_grid,),
            in_specs=[pl.BlockSpec((tr, T), lambda i: (i, 0))],
            out_specs=pl.BlockSpec((tr, 1), lambda i: (i, 0)),
        )
        dim_sem = ("parallel",)
    else:
        need_mask = (T % tt) != 0
        kernel = functools.partial(_var_kernel_chunked, rg=rg, t_total=T, tt=tt,
                                   inv_n=inv_n, inv_nm1=inv_nm1,
                                   need_mask=need_mask)
        grid_spec = pltpu.PrefetchScalarGridSpec(
            num_scalar_prefetch=0,
            grid=(r_grid, t_grid),                 # reduction (time) axis last
            in_specs=[pl.BlockSpec((tr, tt), lambda i, j: (i, j))],
            out_specs=pl.BlockSpec((tr, 1), lambda i, j: (i, 0)),
            scratch_shapes=[pltpu.VMEM((tr, _LANE), jnp.float32),
                            pltpu.VMEM((tr, _LANE), jnp.float32),
                            pltpu.VMEM((tr, 1), jnp.float32)],
        )
        dim_sem = ("parallel", "arbitrary")

    out2 = pl.pallas_call(
        kernel,
        out_shape=jax.ShapeDtypeStruct((R, 1), out_dtype),
        grid_spec=grid_spec,
        compiler_params=pltpu.CompilerParams(
            dimension_semantics=dim_sem,
            vmem_limit_bytes=vmem_limit,
        ),
    )(x2)

    out = out2.reshape(*lead_shape, 1)
    if perm is not None:
        inv_perm = [0] * ndim
        for i, a in enumerate(perm):
            inv_perm[a] = i
        out = jnp.transpose(out, inv_perm)
    return out


class VarLayer:
    """Forward-pass parity with the PyTorch VarLayer module."""

    def __init__(self, dim):
        self.dim = dim

    def __call__(self, x):
        return var_layer(x, dim=self.dim)


if __name__ == "__main__":
    key = jax.random.PRNGKey(0)
    k1, k2, k3 = jax.random.split(key, 3)

    # 1) FBCNet-style NCHW input (batch, bands, channels, time), tiny shape.
    #    Force the Pallas path (the auto heuristic routes this to fused XLA).
    x1 = jax.random.normal(k1, (2, 4, 16, 16), dtype=jnp.float32)
    y1 = jax.block_until_ready(var_layer(x1, dim=3, use_pallas=True))
    r1 = jnp.var(x1, axis=3, keepdims=True, ddof=1)
    assert y1.shape == (2, 4, 16, 1), y1.shape
    assert jnp.allclose(y1, r1, atol=1e-5, rtol=1e-4), "single-block kernel mismatch"

    # Auto path (tiny input -> fused jnp.var fallback) must agree too.
    y1a = jax.block_until_ready(VarLayer(dim=3)(x1))
    assert jnp.allclose(y1a, r1, atol=1e-5, rtol=1e-4), "fallback mismatch"

    # 2) Longer time axis with a non-zero mean (exercises the auto Pallas path
    #    and the first-sample shift numerical-stability fix).
    x2 = jax.random.normal(k2, (2, 9, 32, 256), dtype=jnp.float32) + 3.0
    y2 = jax.block_until_ready(var_layer(x2, dim=3))
    r2 = jnp.var(x2, axis=3, keepdims=True, ddof=1)
    assert y2.shape == (2, 9, 32, 1), y2.shape
    assert jnp.allclose(y2, r2, atol=1e-5, rtol=1e-4), "auto Pallas path mismatch"

    # 3) Force the chunked-time kernel with a ragged tail (300 = 2*128 + 44):
    #    exercises the scratch accumulators and the in-kernel iota mask.
    x3 = jax.random.normal(k3, (4, 8, 16, 300), dtype=jnp.float32)
    y3 = jax.block_until_ready(var_layer(x3, dim=3, use_pallas=True, block_time=128))
    r3 = jnp.var(x3, axis=3, keepdims=True, ddof=1)
    assert y3.shape == (4, 8, 16, 1), y3.shape
    assert jnp.allclose(y3, r3, atol=1e-5, rtol=1e-4), "chunked kernel mismatch"

    print("KERNEL_OK")
</pallas_src>

<mosaic_0001>
module attributes {stable_mosaic.version = 11 : i64} {
  func.func @_var_kernel_single(%arg0: i32, %arg1: memref<64x16xf32, #tpu.memory_space<vmem>>, %arg2: memref<64x1xf32, #tpu.memory_space<vmem>>) attributes {dimension_semantics = [#tpu.dimension_semantics<parallel>], iteration_bounds = array<i64: 2>, scalar_prefetch = 0 : i64, scratch_operands = 0 : i64, tpu.core_type = #tpu.core_type<tc>, window_params = [{transform_indices = @transform_0, window_bounds = array<i64: 64, 16>}, {transform_indices = @transform_1, window_bounds = array<i64: 64, 1>}]} {
    %c0_i32 = arith.constant 0 : i32
    %c1_i32 = arith.constant 1 : i32
    %0 = arith.muli %c0_i32, %c1_i32 : i32
    %c0_i32_0 = arith.constant 0 : i32
    %1 = arith.addi %c0_i32_0, %0 : i32
    %c64_i32 = arith.constant 64 : i32
    %2 = arith.muli %1, %c64_i32 : i32
    %3 = tpu.assume_multiple %2, 64 : i32
    %4 = arith.index_cast %3 : i32 to index
    %c0 = arith.constant 0 : index
    %5 = vector.load %arg1[%4, %c0] : memref<64x16xf32, #tpu.memory_space<vmem>>, vector<64x1xf32>
    %cst = arith.constant 0.000000e+00 : f32
    %6 = vector.broadcast %cst : f32 to vector<64x1xf32>
    %cst_1 = arith.constant 0.000000e+00 : f32
    %7 = vector.broadcast %cst_1 : f32 to vector<64x1xf32>
    %8 = arith.index_cast %3 : i32 to index
    %c0_2 = arith.constant 0 : index
    %9 = vector.load %arg1[%8, %c0_2] : memref<64x16xf32, #tpu.memory_space<vmem>>, vector<64x16xf32>
    %10 = vector.broadcast %5 : vector<64x1xf32> to vector<64x16xf32>
    %11 = arith.subf %9, %10 : vector<64x16xf32>
    %cst_3 = arith.constant dense<0.000000e+00> : vector<64xf32>
    %12 = vector.multi_reduction <add>, %11, %cst_3 [1] : vector<64x16xf32> to vector<64xf32>
    %13 = vector.shape_cast %12 : vector<64xf32> to vector<64x1xf32>
    %14 = arith.addf %6, %13 : vector<64x1xf32>
    %15 = arith.mulf %11, %11 : vector<64x16xf32>
    %cst_4 = arith.constant dense<0.000000e+00> : vector<64xf32>
    %16 = vector.multi_reduction <add>, %15, %cst_4 [1] : vector<64x16xf32> to vector<64xf32>
    %17 = vector.shape_cast %16 : vector<64xf32> to vector<64x1xf32>
    %18 = arith.addf %7, %17 : vector<64x1xf32>
    %19 = arith.mulf %14, %14 : vector<64x1xf32>
    %cst_5 = arith.constant 6.250000e-02 : f32
    %20 = vector.broadcast %cst_5 : f32 to vector<64x1xf32>
    %21 = arith.mulf %19, %20 : vector<64x1xf32>
    %22 = arith.subf %18, %21 : vector<64x1xf32>
    %cst_6 = arith.constant 0.0666666701 : f32
    %23 = vector.broadcast %cst_6 : f32 to vector<64x1xf32>
    %24 = arith.mulf %22, %23 : vector<64x1xf32>
    %cst_7 = arith.constant 0.000000e+00 : f32
    %25 = vector.broadcast %cst_7 : f32 to vector<64x1xf32>
    %26 = arith.maximumf %24, %25 : vector<64x1xf32>
    %27 = arith.index_cast %3 : i32 to index
    %c0_8 = arith.constant 0 : index
    %28 = vector.load %arg2[%27, %c0_8] : memref<64x1xf32, #tpu.memory_space<vmem>>, vector<64x1xf32>
    tpu.vector_store %arg2[%27, %c0_8], %26 {strides = array<i32>} : memref<64x1xf32, #tpu.memory_space<vmem>>, vector<64x1xf32>,
    %c1_i32_9 = arith.constant 1 : i32
    return
  }
  func.func @transform_0(%arg0: i32) -> (i32, i32) {
    %c0_i32 = arith.constant 0 : i32
    %c0_i32_0 = arith.constant 0 : i32
    return %arg0, %c0_i32 : i32, i32
  }
  func.func @transform_1(%arg0: i32) -> (i32, i32) {
    %c0_i32 = arith.constant 0 : i32
    %c0_i32_0 = arith.constant 0 : i32
    return %arg0, %c0_i32 : i32, i32
  }
}

</mosaic_0001>

<bundles_post_ra>
// kernel: tpu_custom_call.1
= control target key start
LH: loop header
LB: loop body
LE: loop exit
PB: predicated region body
PF: predicated region fallthrough
CT: control target
= control target key end

     0   :  { %s395_s6 = smov 0   ;;  %s453_s0 = inlined_call_operand.vmem [shape: f32[128,16], index: 0, kind: input, shape index: {}]   ;;  %s454_s1 = inlined_call_operand.vmem [shape: f32[128,1], index: 1, kind: output, shape index: {}]  }
   0x1 LB: > { %s354_s7 = sadd.s32 4294967295, %s382_s6   ;;  %p358_p0 = scmp.ge.s32.totalorder %s382_s6, 1  ;;  %s382_s6 = sphi %s395_s6, %s11_s6  }
   0x2   : > { %p88_p1 = scmp.lt.s32.totalorder %s382_s6, 3 }
   0x4   : > { %p89_p2 = pnand %p358_p0, %p88_p1 }
   0x5   : > { %s359_s8 = sshll.u32 (!%p89_p2), %s354_s7, 3 }
   0x6   : > { %92 = sbr.rel (%p89_p2) target bundleno = 319 (0x13f), region = 24  ;;  %p109_p3 = scmp.lt.s32.totalorder (!%p89_p2), %s359_s8, 15 }
   0xb   : > { %v384_v0 = vmov 0   ;;  %s456_s8 = smov (!%p109_p3, %s359_s8), 15  ;;  %vm176_vm0 = vcmask 130048   ;;  %vm289_vm1 = vcmask 7168  }
   0xc   : > { %375 = vset.pattern.permute.xlu1 %v384_v0  ;;  %374 = vset.pattern.permute.xlu0 %v384_v0  ;;  %s360_s9 = sshll.u32 %s456_s8, 3 }
   0xd   : > { %s112_s12 = scalar_lea.vmem %s453_s0, %s360_s9  ;;  %s432_s15 = scalar_lea.vmem %s454_s1, %s360_s9 }
   0xe   : > { %v122_v1 = vld [vmem:[%s112_s12 + $0x10] sm:$0xff]  ;;  %v120_v2 = vld [vmem:[%s112_s12] sm:$0xff]  ;;  %v123_v3 = vld [vmem:[%s112_s12 + $0x18] sm:$0xff] }
   0xf   : > { %140 = vperm.xlu1 %375, %v122_v1   ;;  %130 = vperm.xlu0 %374, %v120_v2   ;;  %v121_v4 = vld [vmem:[%s112_s12 + $0x8] sm:$0xff]  ;;  %v124_v6 = vld [vmem:[%s112_s12 + $0x20] sm:$0xff]  ;;  %v127_v7 = vld [vmem:[%s112_s12 + $0x38] sm:$0xff] }
  0x10   : > { %v125_v5 = vld [vmem:[%s112_s12 + $0x28] sm:$0xff]  ;;  %v126_v8 = vld [vmem:[%s112_s12 + $0x30] sm:$0xff] }
  0x13   : > { %145 = vperm.xlu1 %375, %v123_v3   ;;  %135 = vperm.xlu0 %374, %v121_v4  }
  0x17   : > { %155 = vperm.xlu1 %375, %v125_v5   ;;  %150 = vperm.xlu0 %374, %v124_v6  }
  0x1b   : > { %165 = vperm.xlu1 %375, %v127_v7   ;;  %160 = vperm.xlu0 %374, %v126_v8  }
  0x8a   : > { %v141_v9 = vpop.permute.xlu1 %140  ;;  %v131_v10 = vpop.permute.xlu0 %130 }
  0x8b   : > { %v170_v11 = vsub.f32 %v122_v1, %v141_v9  ;;  %v168_v12 = vsub.f32 %v120_v2, %v131_v10 }
  0x8d   : > { %v177_v13 = vsel %vm176_vm0, %v168_v12, 0.0  ;;  %v183_v17 = vsel %vm176_vm0, %v170_v11, 0.0  ;;  %v209_v32 = vmul.f32 %v168_v12, %v168_v12  ;;  %v211_v36 = vmul.f32 %v170_v11, %v170_v11 }
  0x8e   : > { %v146_v14 = vpop.permute.xlu1 %145  ;;  %178 = vadd.xlane.f32.xlu0 %v177_v13  ;;  %v136_v15 = vpop.permute.xlu0 %135 }
  0x8f   : > { %v169_v16 = vsub.f32 %v121_v4, %v136_v15  ;;  %v171_v18 = vsub.f32 %v123_v3, %v146_v14  ;;  %v217_v34 = vsel %vm176_vm0, %v209_v32, 0.0  ;;  %v223_v38 = vsel %vm176_vm0, %v211_v36, 0.0 }
  0x91   : > { %v180_v19 = vsel %vm176_vm0, %v169_v16, 0.0  ;;  %v186_v24 = vsel %vm176_vm0, %v171_v18, 0.0  ;;  %v210_v35 = vmul.f32 %v169_v16, %v169_v16  ;;  %v212_v39 = vmul.f32 %v171_v18, %v171_v18 }
  0x92   : > { %v156_v20 = vpop.permute.xlu1 %155  ;;  %184 = vadd.xlane.f32.xlu0 %v183_v17  ;;  %181 = vadd.xlane.f32.xlu1 %v180_v19  ;;  %v151_v21 = vpop.permute.xlu0 %150 }
  0x93   : > { %v172_v22 = vsub.f32 %v124_v6, %v151_v21  ;;  %v173_v23 = vsub.f32 %v125_v5, %v156_v20  ;;  %v220_v37 = vsel %vm176_vm0, %v210_v35, 0.0  ;;  %v226_v41 = vsel %vm176_vm0, %v212_v39, 0.0 }
  0x95   : > { %v189_v25 = vsel %vm176_vm0, %v172_v22, 0.0  ;;  %v192_v30 = vsel %vm176_vm0, %v173_v23, 0.0  ;;  %v213_v40 = vmul.f32 %v172_v22, %v172_v22  ;;  %v214_v43 = vmul.f32 %v173_v23, %v173_v23 }
  0x96   : > { %v166_v26 = vpop.permute.xlu1 %165  ;;  %187 = vadd.xlane.f32.xlu0 %v186_v24  ;;  %190 = vadd.xlane.f32.xlu1 %v189_v25  ;;  %v161_v27 = vpop.permute.xlu0 %160 }
  0x97   : > { %v174_v28 = vsub.f32 %v126_v8, %v161_v27  ;;  %v175_v29 = vsub.f32 %v127_v7, %v166_v26  ;;  %v229_v42 = vsel %vm176_vm0, %v213_v40, 0.0  ;;  %v232_v45 = vsel %vm176_vm0, %v214_v43, 0.0 }
  0x99   : > { %v195_v31 = vsel %vm176_vm0, %v174_v28, 0.0  ;;  %v198_v33 = vsel %vm176_vm0, %v175_v29, 0.0  ;;  %v215_v44 = vmul.f32 %v174_v28, %v174_v28  ;;  %v216_v47 = vmul.f32 %v175_v29, %v175_v29 }
  0x9a   : > { %193 = vadd.xlane.f32.xlu0 %v192_v30  ;;  %196 = vadd.xlane.f32.xlu1 %v195_v31 }
  0x9b   : > { %v235_v46 = vsel %vm176_vm0, %v215_v44, 0.0  ;;  %v238_v48 = vsel %vm176_vm0, %v216_v47, 0.0 }
  0x9e   : > { %199 = vadd.xlane.f32.xlu0 %v198_v33  ;;  %218 = vadd.xlane.f32.xlu1 %v217_v34 }
  0xa2   : > { %221 = vadd.xlane.f32.xlu0 %v220_v37  ;;  %224 = vadd.xlane.f32.xlu1 %v223_v38 }
  0xa6   : > { %227 = vadd.xlane.f32.xlu0 %v226_v41  ;;  %230 = vadd.xlane.f32.xlu1 %v229_v42 }
  0xaa   : > { %233 = vadd.xlane.f32.xlu0 %v232_v45  ;;  %236 = vadd.xlane.f32.xlu1 %v235_v46 }
  0xae   : > { %239 = vadd.xlane.f32.xlu0 %v238_v48 }
 0x117   : > { %v179_v49 = vpop.xlane.xlu0 %178 }
 0x118   : > { %v249_v54 = vmul.f32 %v179_v49, %v179_v49 }
 0x11a   : > { %v257_v57 = vmul.f32 0.0625, %v249_v54 }
 0x11b   : > { %v182_v50 = vpop.xlane.xlu1 %181  ;;  %v185_v51 = vpop.xlane.xlu0 %184 }
 0x11c   : > { %v250_v58 = vmul.f32 %v182_v50, %v182_v50  ;;  %v251_v59 = vmul.f32 %v185_v51, %v185_v51 }
 0x11e   : > { %v258_v0 = vmul.f32 0.0625, %v250_v58  ;;  %v259_v1 = vmul.f32 0.0625, %v251_v59 }
 0x11f   : > { %v191_v52 = vpop.xlane.xlu1 %190  ;;  %v188_v53 = vpop.xlane.xlu0 %187 }
 0x120   : > { %v253_v63 = vmul.f32 %v191_v52, %v191_v52  ;;  %v252_v2 = vmul.f32 %v188_v53, %v188_v53 }
 0x122   : > { %v261_v9 = vmul.f32 0.0625, %v253_v63  ;;  %v260_v11 = vmul.f32 0.0625, %v252_v2 }
 0x123   : > { %v197_v55 = vpop.xlane.xlu1 %196  ;;  %v194_v56 = vpop.xlane.xlu0 %193 }
 0x124   : > { %v255_v10 = vmul.f32 %v197_v55, %v197_v55  ;;  %v254_v12 = vmul.f32 %v194_v56, %v194_v56 }
 0x126   : > { %v263_v21 = vmul.f32 0.0625, %v255_v10  ;;  %v262_v22 = vmul.f32 0.0625, %v254_v12 }
 0x127   : > { %v219_v60 = vpop.xlane.xlu1 %218  ;;  %v200_v61 = vpop.xlane.xlu0 %199 }
 0x128   : > { %v265_v62 = vsub.f32 %v219_v60, %v257_v57  ;;  %v256_v23 = vmul.f32 %v200_v61, %v200_v61 }
 0x12a   : > { %v273_v3 = vmul.f32 0.06666667, %v265_v62  ;;  %v264_v32 = vmul.f32 0.0625, %v256_v23 }
 0x12b   : > { %v225_v4 = vpop.xlane.xlu1 %224  ;;  %v222_v5 = vpop.xlane.xlu0 %221 }
 0x12c   : > { %v281_v6 = vmax.f32 %v273_v3, 0.0  ;;  %v267_v7 = vsub.f32 %v225_v4, %v259_v1  ;;  %v266_v8 = vsub.f32 %v222_v5, %v258_v0 }
 0x12e   : > { %290 = vst.msk [vmem:[%s432_s15] sm:$0xff] %vm289_vm1, %v281_v6  ;;  %v275_v13 = vmul.f32 0.06666667, %v267_v7  ;;  %v274_v14 = vmul.f32 0.06666667, %v266_v8 }
 0x12f   : > { %v231_v15 = vpop.xlane.xlu1 %230  ;;  %v228_v16 = vpop.xlane.xlu0 %227 }
 0x130   : > { %v283_v17 = vmax.f32 %v275_v13, 0.0  ;;  %v282_v18 = vmax.f32 %v274_v14, 0.0  ;;  %v269_v19 = vsub.f32 %v231_v15, %v261_v9  ;;  %v268_v20 = vsub.f32 %v228_v16, %v260_v11 }
 0x132   : > { %292 = vst.msk [vmem:[%s432_s15 + $0x10] sm:$0xff] %vm289_vm1, %v283_v17  ;;  %291 = vst.msk [vmem:[%s432_s15 + $0x8] sm:$0xff] %vm289_vm1, %v282_v18  ;;  %v277_v24 = vmul.f32 0.06666667, %v269_v19  ;;  %v276_v25 = vmul.f32 0.06666667, %v268_v20 }
 0x133   : > { %v237_v26 = vpop.xlane.xlu1 %236  ;;  %v234_v27 = vpop.xlane.xlu0 %233 }
 0x134   : > { %v285_v28 = vmax.f32 %v277_v24, 0.0  ;;  %v284_v29 = vmax.f32 %v276_v25, 0.0  ;;  %v271_v30 = vsub.f32 %v237_v26, %v263_v21  ;;  %v270_v31 = vsub.f32 %v234_v27, %v262_v22 }
 0x136   : > { %294 = vst.msk [vmem:[%s432_s15 + $0x20] sm:$0xff] %vm289_vm1, %v285_v28  ;;  %293 = vst.msk [vmem:[%s432_s15 + $0x18] sm:$0xff] %vm289_vm1, %v284_v29  ;;  %v279_v33 = vmul.f32 0.06666667, %v271_v30  ;;  %v278_v34 = vmul.f32 0.06666667, %v270_v31 }
 0x137   : > { %v240_v35 = vpop.xlane.xlu0 %239 }
 0x138   : > { %v287_v36 = vmax.f32 %v279_v33, 0.0  ;;  %v286_v37 = vmax.f32 %v278_v34, 0.0  ;;  %v272_v38 = vsub.f32 %v240_v35, %v264_v32 }
 0x13a   : > { %296 = vst.msk [vmem:[%s432_s15 + $0x30] sm:$0xff] %vm289_vm1, %v287_v36  ;;  %295 = vst.msk [vmem:[%s432_s15 + $0x28] sm:$0xff] %vm289_vm1, %v286_v37  ;;  %v280_v39 = vmul.f32 0.06666667, %v272_v38 }
 0x13c   : > { %v288_v40 = vmax.f32 %v280_v39, 0.0 }
 0x13e   : > { %297 = vst.msk [vmem:[%s432_s15 + $0x38] sm:$0xff] %vm289_vm1, %v288_v40 }
 0x13f PF: > { %s11_s6 = sadd.s32 1, %s382_s6  }
 0x140   : > { %p8_p4 = scmp.ge.s32.totalorder %s11_s6, 4  }
 0x142   :  { %10 = sbr.rel (!%p8_p4) target bundleno = 1 (0x1), region = 54 }

</bundles_post_ra>
